<compile_context>
chip_gen: v7x
topology: tpu7x:2x2x1
jax: 0.10.0
libtpu: 0.0.40
codegen_flags: <defaults>
</compile_context>

<pallas_src>
import functools

import jax
import jax.numpy as jnp
from jax import lax
from jax.experimental import pallas as pl
from jax.experimental.pallas import tpu as pltpu


# ---------------------------------------------------------------------------
# Fused kernel
# ---------------------------------------------------------------------------
def _gat_layer(h, mask, w_qkv, num_heads, dh):
    """One MultiHeadGATLayer.

    h:      [N, Din]   (f32, in VMEM / vregs)
    mask:   [N, N]     bool, mask[dst, src] = True iff edge src -> dst
    w_qkv:  [Din, 3*H*Dh]  columns ordered [Q heads | K heads | V heads]
    returns [N, H*Dh]  (torch.cat(head_outs, dim=-1) layout)
    """
    H = num_heads
    # One wide projection for all heads and all of Q/K/V (better MXU fill).
    qkv = jnp.dot(h, w_qkv, preferred_element_type=jnp.float32)      # [N, 3*H*Dh]

    head_outs = []
    for hd in range(H):
        q = qkv[:, hd * dh:(hd + 1) * dh]                            # src rows
        k = qkv[:, (H + hd) * dh:(H + hd + 1) * dh]                  # dst rows
        v = qkv[:, (2 * H + hd) * dh:(2 * H + hd + 1) * dh]          # src rows

        # scores[dst, src] = <q[src], k[dst]>  (contract feature axis, no
        # explicit transpose -> stays on the MXU path).
        scores = lax.dot_general(
            k, q, (((1,), (1,)), ((), ())), preferred_element_type=jnp.float32
        )                                                            # [N, N]
        scores = jnp.where(scores > 0, scores, 0.2 * scores)         # LeakyReLU(0.2)

        # Row-wise softmax over incoming edges only.
        row_max = jnp.max(jnp.where(mask, scores, -1e30), axis=-1, keepdims=True)
        ex = jnp.where(mask, jnp.exp(scores - row_max), 0.0)         # zeros off-edge
        denom = jnp.sum(ex, axis=-1, keepdims=True)
        # Nodes with no in-edges: denom == 0 -> alpha == 0 -> zero output row.
        alpha = ex * pl.reciprocal(jnp.maximum(denom, 1e-30), approx=True)

        head_outs.append(jnp.dot(alpha, v, preferred_element_type=jnp.float32))

    return jnp.concatenate(head_outs, axis=-1)                       # [N, H*Dh]


def _graph_transformer_kernel(*refs, num_heads, hidden_dim, num_layers):
    """refs = (adj, h0, w_qkv_l0..w_qkv_l{L-1}, out_w, out_b, out)."""
    adj_ref, h_ref = refs[0], refs[1]
    w_refs = refs[2:2 + num_layers]
    ow_ref = refs[2 + num_layers]
    ob_ref = refs[3 + num_layers]
    o_ref = refs[4 + num_layers]

    mask = adj_ref[...] > 0.0                                        # computed once
    h = h_ref[...]
    for l in range(num_layers):                                      # unrolled
        h = _gat_layer(h, mask, w_refs[l][...], num_heads, hidden_dim)

    # Final Linear(out_dim) with bias, fused into the same call.
    o_ref[...] = (
        jnp.dot(h, ow_ref[...], preferred_element_type=jnp.float32) + ob_ref[...]
    )


# ---------------------------------------------------------------------------
# Wrapper
# ---------------------------------------------------------------------------
def graph_transformer_forward(params, adj, h, *, num_heads, hidden_dim):
    """adj: [N, N] (adj[dst, src] != 0 iff edge src->dst), h: [N, in_dim]."""
    layer_ws = params["layer_w_qkv"]
    num_layers = len(layer_ws)
    N = h.shape[0]
    out_dim = params["out_w"].shape[1]

    kernel = functools.partial(
        _graph_transformer_kernel,
        num_heads=num_heads,
        hidden_dim=hidden_dim,
        num_layers=num_layers,
    )
    # Single invocation (no grid): every operand is one full-array VMEM block.
    return pl.pallas_call(
        kernel,
        out_shape=jax.ShapeDtypeStruct((N, out_dim), jnp.float32),
        compiler_params=pltpu.CompilerParams(vmem_limit_bytes=64 << 20),
    )(adj, h, *layer_ws, params["out_w"], params["out_b"].reshape(1, out_dim))


# ---------------------------------------------------------------------------
# Deterministic parameter init (shapes follow GraphTransformer.__init__)
# ---------------------------------------------------------------------------
def init_params(key, in_dim, hidden_dim, out_dim, num_layers, num_heads):
    """Per layer one fused projection W_qkv [Din, 3*H*Dh] (columns: Q|K|V blocks,
    each block head-major), matching nn.Linear's uniform(+-1/sqrt(fan_in)) init."""
    params = {"layer_w_qkv": []}
    layer_in_dims = [in_dim] + [hidden_dim * num_heads] * (num_layers - 1)
    for din in layer_in_dims:
        key, sub = jax.random.split(key)
        bound = 1.0 / (din ** 0.5)
        params["layer_w_qkv"].append(
            jax.random.uniform(
                sub, (din, 3 * num_heads * hidden_dim), jnp.float32, -bound, bound
            )
        )
    fan_in = hidden_dim * num_heads
    bound = 1.0 / (fan_in ** 0.5)
    key, k_w, k_b = jax.random.split(key, 3)
    params["out_w"] = jax.random.uniform(
        k_w, (fan_in, out_dim), jnp.float32, -bound, bound
    )
    params["out_b"] = jax.random.uniform(k_b, (out_dim,), jnp.float32, -bound, bound)
    return params


# ---------------------------------------------------------------------------
if __name__ == "__main__":
    # Small shapes consistent with the module's forward.
    N = 16            # number of graph nodes
    IN_DIM = 8
    HIDDEN_DIM = 8
    OUT_DIM = 2
    NUM_LAYERS = 3
    NUM_HEADS = 2

    root = jax.random.PRNGKey(0)
    k_param, k_feat, k_adj = jax.random.split(root, 3)

    params = init_params(k_param, IN_DIM, HIDDEN_DIM, OUT_DIM, NUM_LAYERS, NUM_HEADS)

    # Node features [N, IN_DIM].
    h0 = jax.random.normal(k_feat, (N, IN_DIM), jnp.float32)

    # Dense adjacency mask adj[dst, src]; random edges + self-loops so every
    # node has at least one incoming edge (well-defined softmax, as in DGL
    # graphs with self-loops).
    adj = (jax.random.uniform(k_adj, (N, N)) < 0.3).astype(jnp.float32)
    adj = jnp.maximum(adj, jnp.eye(N, dtype=jnp.float32))

    fwd = jax.jit(
        functools.partial(
            graph_transformer_forward,
            params,
            num_heads=NUM_HEADS,
            hidden_dim=HIDDEN_DIM,
        )
    )
    out = fwd(adj, h0)
    jax.block_until_ready(out)

    assert out.shape == (N, OUT_DIM), out.shape
    assert out.dtype == jnp.float32
    assert bool(jnp.all(jnp.isfinite(out)))
    print("KERNEL_OK")
</pallas_src>

<mosaic_0001>
module attributes {stable_mosaic.version = 11 : i64} {
  func.func @_graph_transformer_kernel(%arg0: memref<16x16xf32, #tpu.memory_space<vmem>>, %arg1: memref<16x8xf32, #tpu.memory_space<vmem>>, %arg2: memref<8x48xf32, #tpu.memory_space<vmem>>, %arg3: memref<16x48xf32, #tpu.memory_space<vmem>>, %arg4: memref<16x48xf32, #tpu.memory_space<vmem>>, %arg5: memref<16x2xf32, #tpu.memory_space<vmem>>, %arg6: memref<1x2xf32, #tpu.memory_space<vmem>>, %arg7: memref<16x2xf32, #tpu.memory_space<vmem>>) attributes {dimension_semantics = [], scalar_prefetch = 0 : i64, scratch_operands = 0 : i64, tpu.core_type = #tpu.core_type<tc>} {
    %c0 = arith.constant 0 : index
    %c0_0 = arith.constant 0 : index
    %0 = vector.load %arg0[%c0, %c0_0] : memref<16x16xf32, #tpu.memory_space<vmem>>, vector<16x16xf32>
    %cst = arith.constant 0.000000e+00 : f32
    %1 = vector.broadcast %cst : f32 to vector<16x16xf32>
    %2 = arith.cmpf ogt, %0, %1 : vector<16x16xf32>
    %c0_1 = arith.constant 0 : index
    %c0_2 = arith.constant 0 : index
    %3 = vector.load %arg1[%c0_1, %c0_2] : memref<16x8xf32, #tpu.memory_space<vmem>>, vector<16x8xf32>
    %c0_3 = arith.constant 0 : index
    %c0_4 = arith.constant 0 : index
    %4 = vector.load %arg2[%c0_3, %c0_4] : memref<8x48xf32, #tpu.memory_space<vmem>>, vector<8x48xf32>
    %cst_5 = arith.constant dense<0.000000e+00> : vector<16x48xf32>
    %5 = tpu.matmul %3, %4, %cst_5 {dimension_numbers = #tpu.dot_dimension_numbers<[1], [0], [0], [1], [0, 0, 1, 1], [], []>} : vector<16x8xf32>, vector<8x48xf32>, vector<16x48xf32> -> vector<16x48xf32>
    %6 = vector.extract_strided_slice %5 {offsets = [0, 0], sizes = [16, 8], strides = [1, 1]} : vector<16x48xf32> to vector<16x8xf32>
    %7 = vector.extract_strided_slice %5 {offsets = [0, 16], sizes = [16, 8], strides = [1, 1]} : vector<16x48xf32> to vector<16x8xf32>
    %8 = vector.extract_strided_slice %5 {offsets = [0, 32], sizes = [16, 8], strides = [1, 1]} : vector<16x48xf32> to vector<16x8xf32>
    %cst_6 = arith.constant dense<0.000000e+00> : vector<16x16xf32>
    %9 = tpu.matmul %7, %6, %cst_6 {dimension_numbers = #tpu.dot_dimension_numbers<[1], [1], [0], [0], [0, 0, 1, 0], [], []>} : vector<16x8xf32>, vector<16x8xf32>, vector<16x16xf32> -> vector<16x16xf32>
    %cst_7 = arith.constant 0.000000e+00 : f32
    %10 = vector.broadcast %cst_7 : f32 to vector<16x16xf32>
    %11 = arith.cmpf ogt, %9, %10 : vector<16x16xf32>
    %cst_8 = arith.constant 2.000000e-01 : f32
    %12 = vector.broadcast %cst_8 : f32 to vector<16x16xf32>
    %13 = arith.mulf %12, %9 : vector<16x16xf32>
    %14 = arith.select %11, %9, %13 : vector<16x16xi1>, vector<16x16xf32>
    %cst_9 = arith.constant -1.000000e+30 : f32
    %15 = vector.broadcast %cst_9 : f32 to vector<16x16xf32>
    %16 = arith.select %2, %14, %15 : vector<16x16xi1>, vector<16x16xf32>
    %cst_10 = arith.constant dense<0xFF800000> : vector<16xf32>
    %17 = vector.multi_reduction <maximumf>, %16, %cst_10 [1] : vector<16x16xf32> to vector<16xf32>
    %18 = vector.shape_cast %17 : vector<16xf32> to vector<16x1xf32>
    %19 = vector.broadcast %18 : vector<16x1xf32> to vector<16x16xf32>
    %20 = arith.subf %14, %19 : vector<16x16xf32>
    %21 = math.exp %20 : vector<16x16xf32>
    %cst_11 = arith.constant 0.000000e+00 : f32
    %22 = vector.broadcast %cst_11 : f32 to vector<16x16xf32>
    %23 = arith.select %2, %21, %22 : vector<16x16xi1>, vector<16x16xf32>
    %cst_12 = arith.constant dense<0.000000e+00> : vector<16xf32>
    %24 = vector.multi_reduction <add>, %23, %cst_12 [1] : vector<16x16xf32> to vector<16xf32>
    %25 = vector.shape_cast %24 : vector<16xf32> to vector<16x1xf32>
    %cst_13 = arith.constant 1.000000e-30 : f32
    %26 = vector.broadcast %cst_13 : f32 to vector<16x1xf32>
    %27 = arith.maximumf %25, %26 : vector<16x1xf32>
    %28 = tpu.reciprocal %27 {approx = true} : vector<16x1xf32> -> vector<16x1xf32>
    %29 = vector.broadcast %28 : vector<16x1xf32> to vector<16x16xf32>
    %30 = arith.mulf %23, %29 : vector<16x16xf32>
    %cst_14 = arith.constant dense<0.000000e+00> : vector<16x8xf32>
    %31 = tpu.matmul %30, %8, %cst_14 {dimension_numbers = #tpu.dot_dimension_numbers<[1], [0], [0], [1], [0, 0, 1, 1], [], []>} : vector<16x16xf32>, vector<16x8xf32>, vector<16x8xf32> -> vector<16x8xf32>
    %32 = vector.extract_strided_slice %5 {offsets = [0, 8], sizes = [16, 8], strides = [1, 1]} : vector<16x48xf32> to vector<16x8xf32>
    %33 = vector.extract_strided_slice %5 {offsets = [0, 24], sizes = [16, 8], strides = [1, 1]} : vector<16x48xf32> to vector<16x8xf32>
    %34 = vector.extract_strided_slice %5 {offsets = [0, 40], sizes = [16, 8], strides = [1, 1]} : vector<16x48xf32> to vector<16x8xf32>
    %cst_15 = arith.constant dense<0.000000e+00> : vector<16x16xf32>
    %35 = tpu.matmul %33, %32, %cst_15 {dimension_numbers = #tpu.dot_dimension_numbers<[1], [1], [0], [0], [0, 0, 1, 0], [], []>} : vector<16x8xf32>, vector<16x8xf32>, vector<16x16xf32> -> vector<16x16xf32>
    %cst_16 = arith.constant 0.000000e+00 : f32
    %36 = vector.broadcast %cst_16 : f32 to vector<16x16xf32>
    %37 = arith.cmpf ogt, %35, %36 : vector<16x16xf32>
    %cst_17 = arith.constant 2.000000e-01 : f32
    %38 = vector.broadcast %cst_17 : f32 to vector<16x16xf32>
    %39 = arith.mulf %38, %35 : vector<16x16xf32>
    %40 = arith.select %37, %35, %39 : vector<16x16xi1>, vector<16x16xf32>
    %cst_18 = arith.constant -1.000000e+30 : f32
    %41 = vector.broadcast %cst_18 : f32 to vector<16x16xf32>
    %42 = arith.select %2, %40, %41 : vector<16x16xi1>, vector<16x16xf32>
    %cst_19 = arith.constant dense<0xFF800000> : vector<16xf32>
    %43 = vector.multi_reduction <maximumf>, %42, %cst_19 [1] : vector<16x16xf32> to vector<16xf32>
    %44 = vector.shape_cast %43 : vector<16xf32> to vector<16x1xf32>
    %45 = vector.broadcast %44 : vector<16x1xf32> to vector<16x16xf32>
    %46 = arith.subf %40, %45 : vector<16x16xf32>
    %47 = math.exp %46 : vector<16x16xf32>
    %cst_20 = arith.constant 0.000000e+00 : f32
    %48 = vector.broadcast %cst_20 : f32 to vector<16x16xf32>
    %49 = arith.select %2, %47, %48 : vector<16x16xi1>, vector<16x16xf32>
    %cst_21 = arith.constant dense<0.000000e+00> : vector<16xf32>
    %50 = vector.multi_reduction <add>, %49, %cst_21 [1] : vector<16x16xf32> to vector<16xf32>
    %51 = vector.shape_cast %50 : vector<16xf32> to vector<16x1xf32>
    %cst_22 = arith.constant 1.000000e-30 : f32
    %52 = vector.broadcast %cst_22 : f32 to vector<16x1xf32>
    %53 = arith.maximumf %51, %52 : vector<16x1xf32>
    %54 = tpu.reciprocal %53 {approx = true} : vector<16x1xf32> -> vector<16x1xf32>
    %55 = vector.broadcast %54 : vector<16x1xf32> to vector<16x16xf32>
    %56 = arith.mulf %49, %55 : vector<16x16xf32>
    %cst_23 = arith.constant dense<0.000000e+00> : vector<16x8xf32>
    %57 = tpu.matmul %56, %34, %cst_23 {dimension_numbers = #tpu.dot_dimension_numbers<[1], [0], [0], [1], [0, 0, 1, 1], [], []>} : vector<16x16xf32>, vector<16x8xf32>, vector<16x8xf32> -> vector<16x8xf32>
    %58 = tpu.concatenate %31, %57 in 1 : vector<16x8xf32>, vector<16x8xf32> -> vector<16x16xf32>
    %c0_24 = arith.constant 0 : index
    %c0_25 = arith.constant 0 : index
    %59 = vector.load %arg3[%c0_24, %c0_25] : memref<16x48xf32, #tpu.memory_space<vmem>>, vector<16x48xf32>
    %cst_26 = arith.constant dense<0.000000e+00> : vector<16x48xf32>
    %60 = tpu.matmul %58, %59, %cst_26 {dimension_numbers = #tpu.dot_dimension_numbers<[1], [0], [0], [1], [0, 0, 1, 1], [], []>} : vector<16x16xf32>, vector<16x48xf32>, vector<16x48xf32> -> vector<16x48xf32>
    %61 = vector.extract_strided_slice %60 {offsets = [0, 0], sizes = [16, 8], strides = [1, 1]} : vector<16x48xf32> to vector<16x8xf32>
    %62 = vector.extract_strided_slice %60 {offsets = [0, 16], sizes = [16, 8], strides = [1, 1]} : vector<16x48xf32> to vector<16x8xf32>
    %63 = vector.extract_strided_slice %60 {offsets = [0, 32], sizes = [16, 8], strides = [1, 1]} : vector<16x48xf32> to vector<16x8xf32>
    %cst_27 = arith.constant dense<0.000000e+00> : vector<16x16xf32>
    %64 = tpu.matmul %62, %61, %cst_27 {dimension_numbers = #tpu.dot_dimension_numbers<[1], [1], [0], [0], [0, 0, 1, 0], [], []>} : vector<16x8xf32>, vector<16x8xf32>, vector<16x16xf32> -> vector<16x16xf32>
    %cst_28 = arith.constant 0.000000e+00 : f32
    %65 = vector.broadcast %cst_28 : f32 to vector<16x16xf32>
    %66 = arith.cmpf ogt, %64, %65 : vector<16x16xf32>
    %cst_29 = arith.constant 2.000000e-01 : f32
    %67 = vector.broadcast %cst_29 : f32 to vector<16x16xf32>
    %68 = arith.mulf %67, %64 : vector<16x16xf32>
    %69 = arith.select %66, %64, %68 : vector<16x16xi1>, vector<16x16xf32>
    %cst_30 = arith.constant -1.000000e+30 : f32
    %70 = vector.broadcast %cst_30 : f32 to vector<16x16xf32>
    %71 = arith.select %2, %69, %70 : vector<16x16xi1>, vector<16x16xf32>
    %cst_31 = arith.constant dense<0xFF800000> : vector<16xf32>
    %72 = vector.multi_reduction <maximumf>, %71, %cst_31 [1] : vector<16x16xf32> to vector<16xf32>
    %73 = vector.shape_cast %72 : vector<16xf32> to vector<16x1xf32>
    %74 = vector.broadcast %73 : vector<16x1xf32> to vector<16x16xf32>
    %75 = arith.subf %69, %74 : vector<16x16xf32>
    %76 = math.exp %75 : vector<16x16xf32>
    %cst_32 = arith.constant 0.000000e+00 : f32
    %77 = vector.broadcast %cst_32 : f32 to vector<16x16xf32>
    %78 = arith.select %2, %76, %77 : vector<16x16xi1>, vector<16x16xf32>
    %cst_33 = arith.constant dense<0.000000e+00> : vector<16xf32>
    %79 = vector.multi_reduction <add>, %78, %cst_33 [1] : vector<16x16xf32> to vector<16xf32>
    %80 = vector.shape_cast %79 : vector<16xf32> to vector<16x1xf32>
    %cst_34 = arith.constant 1.000000e-30 : f32
    %81 = vector.broadcast %cst_34 : f32 to vector<16x1xf32>
    %82 = arith.maximumf %80, %81 : vector<16x1xf32>
    %83 = tpu.reciprocal %82 {approx = true} : vector<16x1xf32> -> vector<16x1xf32>
    %84 = vector.broadcast %83 : vector<16x1xf32> to vector<16x16xf32>
    %85 = arith.mulf %78, %84 : vector<16x16xf32>
    %cst_35 = arith.constant dense<0.000000e+00> : vector<16x8xf32>
    %86 = tpu.matmul %85, %63, %cst_35 {dimension_numbers = #tpu.dot_dimension_numbers<[1], [0], [0], [1], [0, 0, 1, 1], [], []>} : vector<16x16xf32>, vector<16x8xf32>, vector<16x8xf32> -> vector<16x8xf32>
    %87 = vector.extract_strided_slice %60 {offsets = [0, 8], sizes = [16, 8], strides = [1, 1]} : vector<16x48xf32> to vector<16x8xf32>
    %88 = vector.extract_strided_slice %60 {offsets = [0, 24], sizes = [16, 8], strides = [1, 1]} : vector<16x48xf32> to vector<16x8xf32>
    %89 = vector.extract_strided_slice %60 {offsets = [0, 40], sizes = [16, 8], strides = [1, 1]} : vector<16x48xf32> to vector<16x8xf32>
    %cst_36 = arith.constant dense<0.000000e+00> : vector<16x16xf32>
    %90 = tpu.matmul %88, %87, %cst_36 {dimension_numbers = #tpu.dot_dimension_numbers<[1], [1], [0], [0], [0, 0, 1, 0], [], []>} : vector<16x8xf32>, vector<16x8xf32>, vector<16x16xf32> -> vector<16x16xf32>
    %cst_37 = arith.constant 0.000000e+00 : f32
    %91 = vector.broadcast %cst_37 : f32 to vector<16x16xf32>
    %92 = arith.cmpf ogt, %90, %91 : vector<16x16xf32>
    %cst_38 = arith.constant 2.000000e-01 : f32
    %93 = vector.broadcast %cst_38 : f32 to vector<16x16xf32>
    %94 = arith.mulf %93, %90 : vector<16x16xf32>
    %95 = arith.select %92, %90, %94 : vector<16x16xi1>, vector<16x16xf32>
    %cst_39 = arith.constant -1.000000e+30 : f32
    %96 = vector.broadcast %cst_39 : f32 to vector<16x16xf32>
    %97 = arith.select %2, %95, %96 : vector<16x16xi1>, vector<16x16xf32>
    %cst_40 = arith.constant dense<0xFF800000> : vector<16xf32>
    %98 = vector.multi_reduction <maximumf>, %97, %cst_40 [1] : vector<16x16xf32> to vector<16xf32>
    %99 = vector.shape_cast %98 : vector<16xf32> to vector<16x1xf32>
    %100 = vector.broadcast %99 : vector<16x1xf32> to vector<16x16xf32>
    %101 = arith.subf %95, %100 : vector<16x16xf32>
    %102 = math.exp %101 : vector<16x16xf32>
    %cst_41 = arith.constant 0.000000e+00 : f32
    %103 = vector.broadcast %cst_41 : f32 to vector<16x16xf32>
    %104 = arith.select %2, %102, %103 : vector<16x16xi1>, vector<16x16xf32>
    %cst_42 = arith.constant dense<0.000000e+00> : vector<16xf32>
    %105 = vector.multi_reduction <add>, %104, %cst_42 [1] : vector<16x16xf32> to vector<16xf32>
    %106 = vector.shape_cast %105 : vector<16xf32> to vector<16x1xf32>
    %cst_43 = arith.constant 1.000000e-30 : f32
    %107 = vector.broadcast %cst_43 : f32 to vector<16x1xf32>
    %108 = arith.maximumf %106, %107 : vector<16x1xf32>
    %109 = tpu.reciprocal %108 {approx = true} : vector<16x1xf32> -> vector<16x1xf32>
    %110 = vector.broadcast %109 : vector<16x1xf32> to vector<16x16xf32>
    %111 = arith.mulf %104, %110 : vector<16x16xf32>
    %cst_44 = arith.constant dense<0.000000e+00> : vector<16x8xf32>
    %112 = tpu.matmul %111, %89, %cst_44 {dimension_numbers = #tpu.dot_dimension_numbers<[1], [0], [0], [1], [0, 0, 1, 1], [], []>} : vector<16x16xf32>, vector<16x8xf32>, vector<16x8xf32> -> vector<16x8xf32>
    %113 = tpu.concatenate %86, %112 in 1 : vector<16x8xf32>, vector<16x8xf32> -> vector<16x16xf32>
    %c0_45 = arith.constant 0 : index
    %c0_46 = arith.constant 0 : index
    %114 = vector.load %arg4[%c0_45, %c0_46] : memref<16x48xf32, #tpu.memory_space<vmem>>, vector<16x48xf32>
    %cst_47 = arith.constant dense<0.000000e+00> : vector<16x48xf32>
    %115 = tpu.matmul %113, %114, %cst_47 {dimension_numbers = #tpu.dot_dimension_numbers<[1], [0], [0], [1], [0, 0, 1, 1], [], []>} : vector<16x16xf32>, vector<16x48xf32>, vector<16x48xf32> -> vector<16x48xf32>
    %116 = vector.extract_strided_slice %115 {offsets = [0, 0], sizes = [16, 8], strides = [1, 1]} : vector<16x48xf32> to vector<16x8xf32>
    %117 = vector.extract_strided_slice %115 {offsets = [0, 16], sizes = [16, 8], strides = [1, 1]} : vector<16x48xf32> to vector<16x8xf32>
    %118 = vector.extract_strided_slice %115 {offsets = [0, 32], sizes = [16, 8], strides = [1, 1]} : vector<16x48xf32> to vector<16x8xf32>
    %cst_48 = arith.constant dense<0.000000e+00> : vector<16x16xf32>
    %119 = tpu.matmul %117, %116, %cst_48 {dimension_numbers = #tpu.dot_dimension_numbers<[1], [1], [0], [0], [0, 0, 1, 0], [], []>} : vector<16x8xf32>, vector<16x8xf32>, vector<16x16xf32> -> vector<16x16xf32>
    %cst_49 = arith.constant 0.000000e+00 : f32
    %120 = vector.broadcast %cst_49 : f32 to vector<16x16xf32>
    %121 = arith.cmpf ogt, %119, %120 : vector<16x16xf32>
    %cst_50 = arith.constant 2.000000e-01 : f32
    %122 = vector.broadcast %cst_50 : f32 to vector<16x16xf32>
    %123 = arith.mulf %122, %119 : vector<16x16xf32>
    %124 = arith.select %121, %119, %123 : vector<16x16xi1>, vector<16x16xf32>
    %cst_51 = arith.constant -1.000000e+30 : f32
    %125 = vector.broadcast %cst_51 : f32 to vector<16x16xf32>
    %126 = arith.select %2, %124, %125 : vector<16x16xi1>, vector<16x16xf32>
    %cst_52 = arith.constant dense<0xFF800000> : vector<16xf32>
    %127 = vector.multi_reduction <maximumf>, %126, %cst_52 [1] : vector<16x16xf32> to vector<16xf32>
    %128 = vector.shape_cast %127 : vector<16xf32> to vector<16x1xf32>
    %129 = vector.broadcast %128 : vector<16x1xf32> to vector<16x16xf32>
    %130 = arith.subf %124, %129 : vector<16x16xf32>
    %131 = math.exp %130 : vector<16x16xf32>
    %cst_53 = arith.constant 0.000000e+00 : f32
    %132 = vector.broadcast %cst_53 : f32 to vector<16x16xf32>
    %133 = arith.select %2, %131, %132 : vector<16x16xi1>, vector<16x16xf32>
    %cst_54 = arith.constant dense<0.000000e+00> : vector<16xf32>
    %134 = vector.multi_reduction <add>, %133, %cst_54 [1] : vector<16x16xf32> to vector<16xf32>
    %135 = vector.shape_cast %134 : vector<16xf32> to vector<16x1xf32>
    %cst_55 = arith.constant 1.000000e-30 : f32
    %136 = vector.broadcast %cst_55 : f32 to vector<16x1xf32>
    %137 = arith.maximumf %135, %136 : vector<16x1xf32>
    %138 = tpu.reciprocal %137 {approx = true} : vector<16x1xf32> -> vector<16x1xf32>
    %139 = vector.broadcast %138 : vector<16x1xf32> to vector<16x16xf32>
    %140 = arith.mulf %133, %139 : vector<16x16xf32>
    %cst_56 = arith.constant dense<0.000000e+00> : vector<16x8xf32>
    %141 = tpu.matmul %140, %118, %cst_56 {dimension_numbers = #tpu.dot_dimension_numbers<[1], [0], [0], [1], [0, 0, 1, 1], [], []>} : vector<16x16xf32>, vector<16x8xf32>, vector<16x8xf32> -> vector<16x8xf32>
    %142 = vector.extract_strided_slice %115 {offsets = [0, 8], sizes = [16, 8], strides = [1, 1]} : vector<16x48xf32> to vector<16x8xf32>
    %143 = vector.extract_strided_slice %115 {offsets = [0, 24], sizes = [16, 8], strides = [1, 1]} : vector<16x48xf32> to vector<16x8xf32>
    %144 = vector.extract_strided_slice %115 {offsets = [0, 40], sizes = [16, 8], strides = [1, 1]} : vector<16x48xf32> to vector<16x8xf32>
    %cst_57 = arith.constant dense<0.000000e+00> : vector<16x16xf32>
    %145 = tpu.matmul %143, %142, %cst_57 {dimension_numbers = #tpu.dot_dimension_numbers<[1], [1], [0], [0], [0, 0, 1, 0], [], []>} : vector<16x8xf32>, vector<16x8xf32>, vector<16x16xf32> -> vector<16x16xf32>
    %cst_58 = arith.constant 0.000000e+00 : f32
    %146 = vector.broadcast %cst_58 : f32 to vector<16x16xf32>
    %147 = arith.cmpf ogt, %145, %146 : vector<16x16xf32>
    %cst_59 = arith.constant 2.000000e-01 : f32
    %148 = vector.broadcast %cst_59 : f32 to vector<16x16xf32>
    %149 = arith.mulf %148, %145 : vector<16x16xf32>
    %150 = arith.select %147, %145, %149 : vector<16x16xi1>, vector<16x16xf32>
    %cst_60 = arith.constant -1.000000e+30 : f32
    %151 = vector.broadcast %cst_60 : f32 to vector<16x16xf32>
    %152 = arith.select %2, %150, %151 : vector<16x16xi1>, vector<16x16xf32>
    %cst_61 = arith.constant dense<0xFF800000> : vector<16xf32>
    %153 = vector.multi_reduction <maximumf>, %152, %cst_61 [1] : vector<16x16xf32> to vector<16xf32>
    %154 = vector.shape_cast %153 : vector<16xf32> to vector<16x1xf32>
    %155 = vector.broadcast %154 : vector<16x1xf32> to vector<16x16xf32>
    %156 = arith.subf %150, %155 : vector<16x16xf32>
    %157 = math.exp %156 : vector<16x16xf32>
    %cst_62 = arith.constant 0.000000e+00 : f32
    %158 = vector.broadcast %cst_62 : f32 to vector<16x16xf32>
    %159 = arith.select %2, %157, %158 : vector<16x16xi1>, vector<16x16xf32>
    %cst_63 = arith.constant dense<0.000000e+00> : vector<16xf32>
    %160 = vector.multi_reduction <add>, %159, %cst_63 [1] : vector<16x16xf32> to vector<16xf32>
    %161 = vector.shape_cast %160 : vector<16xf32> to vector<16x1xf32>
    %cst_64 = arith.constant 1.000000e-30 : f32
    %162 = vector.broadcast %cst_64 : f32 to vector<16x1xf32>
    %163 = arith.maximumf %161, %162 : vector<16x1xf32>
    %164 = tpu.reciprocal %163 {approx = true} : vector<16x1xf32> -> vector<16x1xf32>
    %165 = vector.broadcast %164 : vector<16x1xf32> to vector<16x16xf32>
    %166 = arith.mulf %159, %165 : vector<16x16xf32>
    %cst_65 = arith.constant dense<0.000000e+00> : vector<16x8xf32>
    %167 = tpu.matmul %166, %144, %cst_65 {dimension_numbers = #tpu.dot_dimension_numbers<[1], [0], [0], [1], [0, 0, 1, 1], [], []>} : vector<16x16xf32>, vector<16x8xf32>, vector<16x8xf32> -> vector<16x8xf32>
    %168 = tpu.concatenate %141, %167 in 1 : vector<16x8xf32>, vector<16x8xf32> -> vector<16x16xf32>
    %c0_66 = arith.constant 0 : index
    %c0_67 = arith.constant 0 : index
    %169 = vector.load %arg5[%c0_66, %c0_67] : memref<16x2xf32, #tpu.memory_space<vmem>>, vector<16x2xf32>
    %cst_68 = arith.constant dense<0.000000e+00> : vector<16x2xf32>
    %170 = tpu.matmul %168, %169, %cst_68 {dimension_numbers = #tpu.dot_dimension_numbers<[1], [0], [0], [1], [0, 0, 1, 1], [], []>} : vector<16x16xf32>, vector<16x2xf32>, vector<16x2xf32> -> vector<16x2xf32>
    %c0_69 = arith.constant 0 : index
    %c0_70 = arith.constant 0 : index
    %171 = vector.load %arg6[%c0_69, %c0_70] : memref<1x2xf32, #tpu.memory_space<vmem>>, vector<1x2xf32>
    %172 = vector.broadcast %171 : vector<1x2xf32> to vector<16x2xf32>
    %173 = arith.addf %170, %172 : vector<16x2xf32>
    %c0_71 = arith.constant 0 : index
    %c0_72 = arith.constant 0 : index
    %174 = vector.load %arg7[%c0_71, %c0_72] : memref<16x2xf32, #tpu.memory_space<vmem>>, vector<16x2xf32>
    tpu.vector_store %arg7[%c0_71, %c0_72], %173 {strides = array<i32>} : memref<16x2xf32, #tpu.memory_space<vmem>>, vector<16x2xf32>,
    return
  }
}

</mosaic_0001>

<bundles_post_ra>
// kernel: graph_transformer_forward.1
= control target key start
LH: loop header
LB: loop body
LE: loop exit
PB: predicated region body
PF: predicated region fallthrough
CT: control target
= control target key end

     0   :  { %12 = vsyncpa [#allocation3], 0  ;;  %s2754_s0 = inlined_call_operand.hbm [shape: f32[16,16], index: 0, kind: input, shape index: {}]   ;;  %s2755_s1 = inlined_call_operand.hbm [shape: f32[16,8], index: 1, kind: input, shape index: {}]   ;;  %s2756_s2 = inlined_call_operand.hbm [shape: f32[8,48], index: 2, kind: input, shape index: {}]   ;;  %s2757_s3 = inlined_call_operand.hbm [shape: f32[16,48], index: 3, kind: input, shape index: {}]   ;;  %s2758_s4 = inlined_call_operand.hbm [shape: f32[16,48], index: 4, kind: input, shape index: {}]   ;;  %s2759_s5 = inlined_call_operand.hbm [shape: f32[16,2], index: 5, kind: input, shape index: {}]   ;;  %s2760_s6 = inlined_call_operand.hbm [shape: f32[1,2], index: 6, kind: input, shape index: {}]   ;;  %s2761_s7 = inlined_call_operand.hbm [shape: f32[16,2], index: 7, kind: output, shape index: {}]  }
   0x1   :  { %13 = vsyncpa [#allocation6], 0 }
   0x2   :  { %14 = vsyncpa [#allocation9], 0 }
   0x3   :  { %15 = vsyncpa [#allocation12], 0 }
   0x4   :  { %16 = vsyncpa [#allocation4], 0  ;;  %s2367_s24 = smov [#allocation5]   ;;  %s2368_s26 = smov [#allocation8]  }
   0x5   :  { %s34_s25 = sshll.u32 %s2367_s24, 4  ;;  %s56_s27 = sshll.u32 %s2368_s26, 4  ;;  %s35_s25 = int_to_ptr.vmem [resolvable:$true] %s34_s25  ;;  %s2422_s27 = int_to_ptr.vmem [resolvable:$true] %s56_s27 }
   0x6   :  { %s2181_s30 = scalar_lea.hbm %s2755_s1, 256 }
   0x7   :  { %p2182_p0 = scmp.ne.s32.totalorder %s2755_s1, %s2181_s30  ;;  %p2185_p1 = scmp.lt.u32.totalorder %s2181_s30, %s2755_s1 }
   0x9   :  { %p2187_p2 = pnand %p2185_p1, %p2182_p0 }
   0xb   :  { %2190 = shalt.err (!%p2187_p2)
}
   0xc   :  { %s2191_s12 = scalar_lea.vmem %s35_s25, 256  ;;  %p2196_p4 = scmp.lt.s32.totalorder %s35_s25, %s35_s25 }
   0xd   :  { %p2192_p3 = scmp.ne.s32.totalorder %s35_s25, %s2191_s12  ;;  %p2197_p5 = scmp.lt.s32.totalorder %s2191_s12, %s2191_s12 }
   0xf   :  { %p2198_p6 = por %p2197_p5, %p2196_p4 }
  0x11   :  { %p2199_p7 = pnand %p2198_p6, %p2192_p3 }
  0x13   :  { %2202 = shalt.err (!%p2199_p7)
}
  0x14   :  { %s2369_s13 = smov 128   ;;  %s2370_s14 = smov 8  }
  0x15   :  { %40 = dma.hbm_to_vmem [thread:$0]  %s2755_s1, 256, %s35_s25, [#allocation6], %s2369_s13, %s2369_s13, %s2370_s14  }
  0x16   :  { %s2203_s19 = scalar_lea.hbm %s2757_s3, 256 }
  0x17   :  { %p2204_p8 = scmp.ne.s32.totalorder %s2757_s3, %s2203_s19  ;;  %p2207_p9 = scmp.lt.u32.totalorder %s2203_s19, %s2757_s3 }
  0x19   :  { %p2209_p10 = pnand %p2207_p9, %p2204_p8 }
  0x1b   :  { %2212 = shalt.err (!%p2209_p10)
}
  0x1c   :  { %s2213_s24 = scalar_lea.vmem %s2422_s27, 256  ;;  %p2218_p12 = scmp.lt.s32.totalorder %s2422_s27, %s2422_s27 }
  0x1d   :  { %p2214_p11 = scmp.ne.s32.totalorder %s2422_s27, %s2213_s24  ;;  %p2219_p13 = scmp.lt.s32.totalorder %s2213_s24, %s2213_s24 }
  0x1f   :  { %p2220_p0 = por %p2219_p13, %p2218_p12 }
  0x21   :  { %p2221_p1 = pnand %p2220_p0, %p2214_p11 }
  0x23   :  { %2224 = shalt.err (!%p2221_p1)
}
  0x24   :  { %62 = dma.hbm_to_vmem [thread:$0]  %s2757_s3, 256, %s2422_s27, [#allocation9], %s2369_s13, %s2369_s13, %s2370_s14  }
  0x25   :  { %s2371_s26 = smov [#allocation11]   ;;  %s2372_s29 = smov [#allocation2]  }
  0x26   :  { %s80_s28 = sshll.u32 %s2371_s26, 4  ;;  %s22_s30 = sshll.u32 %s2372_s29, 4  ;;  %s81_s28 = int_to_ptr.vmem [resolvable:$true] %s80_s28  ;;  %s2459_s30 = int_to_ptr.vmem [resolvable:$true] %s22_s30 }
  0x27   :  { %s2225_s10 = scalar_lea.hbm %s2759_s5, 256 }
  0x28   :  { %p2226_p2 = scmp.ne.s32.totalorder %s2759_s5, %s2225_s10  ;;  %p2229_p3 = scmp.lt.u32.totalorder %s2225_s10, %s2759_s5 }
  0x2a   :  { %p2231_p4 = pnand %p2229_p3, %p2226_p2 }
  0x2c   :  { %2234 = shalt.err (!%p2231_p4)
}
  0x2d   :  { %s2235_s3 = scalar_lea.vmem %s81_s28, 256  ;;  %p2240_p6 = scmp.lt.s32.totalorder %s81_s28, %s81_s28 }
  0x2e   :  { %p2236_p5 = scmp.ne.s32.totalorder %s81_s28, %s2235_s3  ;;  %p2241_p7 = scmp.lt.s32.totalorder %s2235_s3, %s2235_s3 }
  0x30   :  { %p2242_p8 = por %p2241_p7, %p2240_p6 }
  0x32   :  { %p2243_p9 = pnand %p2242_p8, %p2236_p5 }
  0x34   :  { %2246 = shalt.err (!%p2243_p9)
}
  0x35   :  { %86 = dma.hbm_to_vmem [thread:$0]  %s2759_s5, 256, %s81_s28, [#allocation12], %s2369_s13, %s2369_s13, %s2370_s14  }
  0x36   :  { %s2247_s20 = scalar_lea.hbm %s2754_s0, 256 }
  0x37   :  { %p2248_p10 = scmp.ne.s32.totalorder %s2754_s0, %s2247_s20  ;;  %p2251_p11 = scmp.lt.u32.totalorder %s2247_s20, %s2754_s0 }
  0x39   :  { %p2253_p12 = pnand %p2251_p11, %p2248_p10 }
  0x3b   :  { %2256 = shalt.err (!%p2253_p12)
}
  0x3c   :  { %s2257_s1 = scalar_lea.vmem %s2459_s30, 256  ;;  %p2262_p0 = scmp.lt.s32.totalorder %s2459_s30, %s2459_s30 }
  0x3d   :  { %p2258_p13 = scmp.ne.s32.totalorder %s2459_s30, %s2257_s1  ;;  %p2263_p1 = scmp.lt.s32.totalorder %s2257_s1, %s2257_s1 }
  0x3f   :  { %p2264_p2 = por %p2263_p1, %p2262_p0 }
  0x41   :  { %p2265_p3 = pnand %p2264_p2, %p2258_p13 }
  0x43   :  { %2268 = shalt.err (!%p2265_p3)
}
  0x44   :  { %28 = dma.hbm_to_vmem [thread:$0]  %s2754_s0, 256, %s2459_s30, [#allocation3], %s2369_s13, %s2369_s13, %s2370_s14  }
  0x45   :  { %s2373_s26 = smov [#allocation7]   ;;  %s2374_s29 = smov [#allocation10]  }
  0x46   :  { %s47_s28 = sshll.u32 %s2373_s26, 4  ;;  %s68_s8 = sshll.u32 %s2374_s29, 4  ;;  %s48_s28 = int_to_ptr.vmem [resolvable:$true] %s47_s28  ;;  %s2496_s8 = int_to_ptr.vmem [resolvable:$true] %s68_s8 }
  0x47   :  { %s2269_s11 = scalar_lea.hbm %s2756_s2, 128 }
  0x48   :  { %p2270_p4 = scmp.ne.s32.totalorder %s2756_s2, %s2269_s11  ;;  %p2273_p5 = scmp.lt.u32.totalorder %s2269_s11, %s2756_s2 }
  0x4a   :  { %p2275_p6 = pnand %p2273_p5, %p2270_p4 }
  0x4c   :  { %2278 = shalt.err (!%p2275_p6)
}
  0x4d   :  { %s2279_s0 = scalar_lea.vmem %s48_s28, 128  ;;  %p2284_p8 = scmp.lt.s32.totalorder %s48_s28, %s48_s28 }
  0x4e   :  { %p2280_p7 = scmp.ne.s32.totalorder %s48_s28, %s2279_s0  ;;  %p2285_p9 = scmp.lt.s32.totalorder %s2279_s0, %s2279_s0 }
  0x50   :  { %p2286_p10 = por %p2285_p9, %p2284_p8 }
  0x52   :  { %p2287_p11 = pnand %p2286_p10, %p2280_p7 }
  0x54   :  { %2290 = shalt.err (!%p2287_p11)
}
  0x55   :  { %50 = dma.hbm_to_vmem [thread:$0]  %s2756_s2, 128, %s48_s28, [#allocation6]  }
  0x56   :  { %s2291_s19 = scalar_lea.hbm %s2758_s4, 256 }
  0x57   :  { %p2292_p12 = scmp.ne.s32.totalorder %s2758_s4, %s2291_s19  ;;  %p2295_p13 = scmp.lt.u32.totalorder %s2291_s19, %s2758_s4 }
  0x59   :  { %p2297_p0 = pnand %p2295_p13, %p2292_p12 }
  0x5b   :  { %2300 = shalt.err (!%p2297_p0)
}
  0x5c   :  { %s2301_s24 = scalar_lea.vmem %s2496_s8, 256  ;;  %p2306_p2 = scmp.lt.s32.totalorder %s2496_s8, %s2496_s8 }
  0x5d   :  { %p2302_p1 = scmp.ne.s32.totalorder %s2496_s8, %s2301_s24  ;;  %p2307_p3 = scmp.lt.s32.totalorder %s2301_s24, %s2301_s24 }
  0x5f   :  { %p2308_p4 = por %p2307_p3, %p2306_p2 }
  0x61   :  { %p2309_p5 = pnand %p2308_p4, %p2302_p1 }
  0x63   :  { %2312 = shalt.err (!%p2309_p5)
}
  0x64   :  { %74 = dma.hbm_to_vmem [thread:$0]  %s2758_s4, 256, %s2496_s8, [#allocation9], %s2369_s13, %s2369_s13, %s2370_s14  }
  0x65   :  { %s2375_s5 = smov [#allocation13]   ;;  %s2313_s29 = scalar_lea.hbm %s2760_s6, 16 }
  0x66   :  { %s93_s25 = sshll.u32 %s2375_s5, 4  ;;  %p2314_p6 = scmp.ne.s32.totalorder %s2760_s6, %s2313_s29  ;;  %s94_s25 = int_to_ptr.vmem [resolvable:$true] %s93_s25 }
  0x67   :  { %p2317_p7 = scmp.lt.u32.totalorder %s2313_s29, %s2760_s6 }
  0x69   :  { %p2319_p8 = pnand %p2317_p7, %p2314_p6 }
  0x6b   :  { %2322 = shalt.err (!%p2319_p8)
}
  0x6c   :  { %s2323_s15 = scalar_lea.vmem %s94_s25, 16  ;;  %s2327_s4 = scalar_lea.vmem %s94_s25, 32 }
  0x6d   :  { %p2324_p9 = scmp.ne.s32.totalorder %s94_s25, %s2323_s15  ;;  %p2328_p10 = scmp.lt.s32.totalorder %s94_s25, %s94_s25 }
  0x6e   :  { %p2329_p11 = scmp.lt.s32.totalorder %s2327_s4, %s2323_s15 }
  0x70   :  { %p2330_p12 = por %p2329_p11, %p2328_p10 }
  0x72   :  { %p2331_p13 = pnand %p2330_p12, %p2324_p9 }
  0x74   :  { %2334 = shalt.err (!%p2331_p13)
}
  0x75   :  { %96 = dma.hbm_to_vmem [thread:$0]  %s2760_s6, 16, %s94_s25, [#allocation12]  }
  0x76   :  { %2357 = dma.done.wait [#allocation3], 256  }
  0x77   :  { %2358 = vsyncadd [#allocation3], 4294967040 }
  0x78   :  { %2359 = dma.done.wait [#allocation6], 384  }
  0x79   :  { %2360 = vsyncadd [#allocation6], 4294966912 }
  0x7a   :  { %2361 = dma.done.wait [#allocation9], 512  }
  0x7b   :  { %2362 = vsyncadd [#allocation9], 4294966784 }
  0x7c   :  { %2363 = dma.done.wait [#allocation12], 272  }
  0x7d   :  { %2364 = vsyncadd [#allocation12], 4294967024  ;;  %vm125_vm0 = vcmask 64512   ;;  %v124_v0 = vld [vmem:[#allocation7] sm:$0xff]  ;;  %v122_v1 = vld [vmem:[#allocation5] sm:$0xff]  ;;  %s2376_s6 = smov 112  }
  0x7e   :  { %v123_v2 = vld [vmem:[#allocation5 + $0x8] sm:$0xff]  ;;  %1891 = vmatprep.subr.mxu0 %v124_v0  ;;  %1893 = vmatprep.mubr.msk.f32.mxu0 %vm125_vm0, %v122_v1  ;;  %vm2546_vm1 = vmpackc.low %vm125_vm0, %vm125_vm0  ;;  %v2560_v10 = vld [vmem:[#allocation2] sm:$0xff]  ;;  %vm304_vm5 = vcmask 130048   ;;  %s2377_s3 = smov 96   ;;  %s2378_s0 = smov 120  }
  0x7f   :  { %1892 = vmatpush3.msra.mxu0 %v124_v0  ;;  %v2562_v14 = vld [vmem:[#allocation2 + $0x8] sm:$0xff]  ;;  %vm120_vm4 = vcmp.gt.f32.partialorder %v2560_v10, 0.0  ;;  %s2379_s30 = smov 104   ;;  %s2380_s27 = smov 88  }
  0x80   :  { %1894 = vmatmul.mubr.msk.f32.vlgmr.msra.gmra.mrb[0].mxu0 %vm125_vm0, %v123_v2  ;;  %vm121_vm6 = vcmp.gt.f32.partialorder %v2562_v14, 0.0  ;;  %s2381_s17 = smov [#allocation14]  }
  0x81   :  { %s1768_s18 = sshll.u32 %s2381_s17, 4  ;;  %s1769_s18 = int_to_ptr.vmem [resolvable:$true] %s1768_s18 }
  0x82   :  { %s2335_s19 = scalar_lea.vmem %s1769_s18, 256  ;;  %p2340_p1 = scmp.lt.s32.totalorder %s1769_s18, %s1769_s18 }
  0x83   :  { %p2336_p0 = scmp.ne.s32.totalorder %s1769_s18, %s2335_s19  ;;  %p2341_p2 = scmp.lt.s32.totalorder %s2335_s19, %s2335_s19 }
  0x85   :  { %p2342_p3 = por %p2341_p2, %p2340_p1 }
  0x87   :  { %p2343_p4 = pnand %p2342_p3, %p2336_p0 }
 0x153   :  { %v1895_v3 = vpop.f32.mrb[0].mxu0 }
 0x154   :  { %v198_v4 = vpop.f32.mrb[1].mxu0 }
 0x155   :  { %209 = vrot.lane.b32.xlu0 %v198_v4, %s2376_s6  ;;  %v2001_v6 = vpack.c.bf16 %v1895_v3, %v198_v4  ;;  %v2551_v7 = vpack.i.bf16 %v1895_v3, %v198_v4 }
 0x157   :  { %2003 = vmatprep.subr.msk.bf16.mxu1 %vm2546_vm1, %v2001_v6 }
 0x158   :  { %2006 = vmatpush3.bf16.xpose.msk.msra.mxu1 %vm2546_vm1, %v2001_v6 }
 0x159   :  { %211 = vrot.lane.b32.xlu0 %v1895_v3, %s2376_s6 }
 0x1c7   :  { %v210_v8 = vpop.permute.xlu0 %209 }
 0x1c8   :  { %1900 = vmatprep.mubr.msk.f32.mxu1 %vm125_vm0, %v210_v8 }
 0x1cb   :  { %v212_v9 = vpop.permute.xlu0 %211 }
 0x1cc   :  { %1901 = vmatmul.mubr.msk.f32.vlgmr.msra.gmra.mrb[0].mxu1 %vm125_vm0, %v212_v9 }
 0x29f   :  { %v1902_v11 = vpop.f32.mrb[0].mxu1 }
 0x2a0   :  { %vm297_vm2 = vcmp.gt.f32.partialorder %v1902_v11, 0.0  ;;  %v299_v12 = vmul.f32 0.2, %v1902_v11  ;;  %v287_v13 = vpop.f32.mrb[1].mxu1 }
 0x2a1   :  { %vm296_vm3 = vcmp.gt.f32.partialorder %v287_v13, 0.0  ;;  %v298_v15 = vmul.f32 0.2, %v287_v13 }
 0x2a2   :  { %v301_v17 = vsel %vm297_vm2, %v1902_v11, %v299_v12 }
 0x2a3   :  { %v300_v16 = vsel %vm296_vm3, %v287_v13, %v298_v15  ;;  %v303_v20 = vsel %vm121_vm6, %v301_v17, -1e+30 }
 0x2a4   :  { %v302_v18 = vsel %vm120_vm4, %v300_v16, -1e+30  ;;  %v308_v21 = vsel %vm304_vm5, %v303_v20, -inf }
 0x2a5   :  { %v305_v19 = vsel %vm304_vm5, %v302_v18, -inf }
 0x2a6   :  { %306 = vmax.xlane.f32.xlu1 %v305_v19 }
 0x2aa   :  { %309 = vmax.xlane.f32.xlu1 %v308_v21 }
 0x333   :  { %v307_v22 = vpop.xlane.xlu1 %306 }
 0x334   :  { %v311_v23 = vsub.f32 %v300_v16, %v307_v22 }
 0x336   :  { %v313_v24 = vmul.f32 1.442695, %v311_v23 }
 0x337   :  { %v310_v25 = vpop.xlane.xlu1 %309 }
 0x338   :  { %2133 = vpow2.f32 %v313_v24  ;;  %v312_v26 = vsub.f32 %v301_v17, %v310_v25 }
 0x33a   :  { %v315_v27 = vmul.f32 1.442695, %v312_v26 }
 0x33c   :  { %2135 = vpow2.f32 %v315_v27 }
 0x342   :  { %v2134_v28 = vpop.eup %2133 }
 0x343   :  { %v317_v29 = vsel %vm120_vm4, %v2134_v28, 0.0  ;;  %v641_v28 = vld [vmem:[#allocation8 + $0x8] sm:$0xff] }
 0x344   :  { %v319_v30 = vsel %vm304_vm5, %v317_v29, 0.0 }
 0x345   :  { %320 = vadd.xlane.f32.xlu0 %v319_v30 }
 0x346   :  { %v2136_v31 = vpop.eup %2135 }
 0x347   :  { %v318_v32 = vsel %vm121_vm6, %v2136_v31, 0.0 }
 0x348   :  { %v322_v33 = vsel %vm304_vm5, %v318_v32, 0.0 }
 0x349   :  { %323 = vadd.xlane.f32.xlu1 %v322_v33 }
 0x35a   :  { %2089 = vrot.lane.b32.xlu1 %v2551_v7, %s2377_s3 }
 0x35e   :  { %2094 = vrot.lane.b32.xlu1 %v2551_v7, %s2378_s0 }
 0x362   :  { %418 = vrot.lane.b32.xlu1 %v198_v4, %s2379_s30 }
 0x366   :  { %420 = vrot.lane.b32.xlu1 %v1895_v3, %s2379_s30 }
 0x3d2   :  { %v321_v34 = vpop.xlane.xlu0 %320 }
 0x3d3   :  { %v325_v35 = vmax.f32 %v321_v34, 1e-30 }
 0x3d5   :  { %2137 = vrcp.f32 %v325_v35 }
 0x3d6   :  { %v324_v36 = vpop.xlane.xlu1 %323 }
 0x3d7   :  { %v326_v37 = vmax.f32 %v324_v36, 1e-30 }
 0x3d9   :  { %2139 = vrcp.f32 %v326_v37 }
 0x3da   :  { %v2090_v38 = vpop.permute.xlu1 %2089 }
 0x3db   :  { %v2092_v39 = vunpack.i.h.bf16 %v2090_v38  ;;  %v2091_v40 = vunpack.i.l.bf16 %v2090_v38 }
 0x3dd   :  { %v2007_v41 = vpack.c.bf16 %v2092_v39, %v2091_v40 }
 0x3de   :  { %v2095_v42 = vpop.permute.xlu1 %2094 }
 0x3df   :  { %v2138_v43 = vpop.eup %2137  ;;  %v2097_v44 = vunpack.i.h.bf16 %v2095_v42  ;;  %v2096_v45 = vunpack.i.l.bf16 %v2095_v42  ;;  %2008 = vmatprep.subr.bf16.mxu0 %v2007_v41 }
 0x3e0   :  { %2010 = vmatpush3.bf16.msra.mxu0 %v2007_v41  ;;  %v329_v46 = vmul.f32 %v2138_v43, %v317_v29 }
 0x3e1   :  { %v2011_v47 = vpack.c.bf16 %v2097_v44, %v2096_v45 }
 0x3e2   :  { %1907 = vmatprep.mubr.msk.f32.mxu0 %vm304_vm5, %v329_v46  ;;  %v419_v50 = vpop.permute.xlu1 %418 }
 0x3e3   :  { %v2140_v48 = vpop.eup %2139  ;;  %2013 = vmatprep.subr.msk.bf16.mxu0 %vm2546_vm1, %v2011_v47 }
 0x3e4   :  { %v330_v49 = vmul.f32 %v2140_v48, %v318_v32 }
 0x3e6   :  { %1908 = vmatmul.mubr.msk.f32.vlgmr.msra.gmra.mrb[2].mxu0 %vm304_vm5, %v330_v49  ;;  %v421_v51 = vpop.permute.xlu1 %420 }
 0x3e7   :  { %1914 = vmatprep.mubr.msk.f32.mxu0 %vm125_vm0, %v419_v50 }
 0x3e9   :  { %2016 = vmatpush3.bf16.xpose.msk.msra.mxu0 %vm2546_vm1, %v2011_v47 }
 0x3f0   :  { %1915 = vmatmul.mubr.msk.f32.vlgmr.msra.gmra.mrb[4].mxu0 %vm125_vm0, %v421_v51 }
 0x4b9   :  { %v2592_v52 = vpop.f32.mrb[2].mxu0 }
 0x4ba   :  { %v409_v53 = vpop.f32.mrb[3].mxu0 }
 0x4c3   :  { %v1916_v54 = vpop.f32.mrb[4].mxu0 }
 0x4c4   :  { %vm510_vm7 = vcmp.gt.f32.partialorder %v1916_v54, 0.0  ;;  %v512_v55 = vmul.f32 0.2, %v1916_v54  ;;  %v500_v56 = vpop.f32.mrb[5].mxu0 }
 0x4c5   :  { %vm509_vm8 = vcmp.gt.f32.partialorder %v500_v56, 0.0  ;;  %v511_v57 = vmul.f32 0.2, %v500_v56 }
 0x4c6   :  { %v514_v58 = vsel %vm510_vm7, %v1916_v54, %v512_v55 }
 0x4c7   :  { %v516_v59 = vsel %vm121_vm6, %v514_v58, -1e+30  ;;  %v513_v60 = vsel %vm509_vm8, %v500_v56, %v511_v57 }
 0x4c8   :  { %v520_v61 = vsel %vm304_vm5, %v516_v59, -inf  ;;  %v515_v62 = vsel %vm120_vm4, %v513_v60, -1e+30 }
 0x4c9   :  { %521 = vmax.xlane.f32.xlu1 %v520_v61  ;;  %v517_v63 = vsel %vm304_vm5, %v515_v62, -inf }
 0x4ca   :  { %518 = vmax.xlane.f32.xlu0 %v517_v63 }
 0x556   :  { %v522_v0 = vpop.xlane.xlu1 %521 }
 0x557   :  { %v524_v1 = vsub.f32 %v514_v58, %v522_v0  ;;  %v519_v2 = vpop.xlane.xlu0 %518 }
 0x558   :  { %v523_v3 = vsub.f32 %v513_v60, %v519_v2 }
 0x559   :  { %v527_v4 = vmul.f32 1.442695, %v524_v1 }
 0x55a   :  { %v525_v6 = vmul.f32 1.442695, %v523_v3 }
 0x55b   :  { %2141 = vpow2.f32 %v527_v4 }
 0x55c   :  { %2143 = vpow2.f32 %v525_v6 }
 0x565   :  { %v2142_v8 = vpop.eup %2141 }
 0x566   :  { %v2144_v9 = vpop.eup %2143  ;;  %v530_v11 = vsel %vm121_vm6, %v2142_v8, 0.0 }
 0x567   :  { %v534_v12 = vsel %vm304_vm5, %v530_v11, 0.0  ;;  %v529_v13 = vsel %vm120_vm4, %v2144_v9, 0.0 }
 0x568   :  { %535 = vadd.xlane.f32.xlu0 %v534_v12  ;;  %v531_v15 = vsel %vm304_vm5, %v529_v13, 0.0 }
 0x56c   :  { %532 = vadd.xlane.f32.xlu0 %v531_v15 }
 0x582   :  { %2099 = vrot.lane.b32.xlu0 %v2551_v7, %s2380_s27  ;;  %v640_v7 = vld [vmem:[#allocation8] sm:$0xff] }
 0x583   :  { %v2021_v29 = vpack.c.bf16 %v641_v28, %v640_v7 }
 0x5f5   :  { %v536_v16 = vpop.xlane.xlu0 %535 }
 0x5f6   :  { %v538_v17 = vmax.f32 %v536_v16, 1e-30 }
 0x5f8   :  { %2145 = vrcp.f32 %v538_v17 }
 0x5f9   :  { %v533_v18 = vpop.xlane.xlu0 %532 }
 0x5fa   :  { %v537_v19 = vmax.f32 %v533_v18, 1e-30 }
 0x5fc   :  { %2147 = vrcp.f32 %v537_v19 }
 0x5fd   :  { %v2100_v20 = vpop.permute.xlu0 %2099 }
 0x5fe   :  { %v2102_v21 = vunpack.i.h.bf16 %v2100_v20  ;;  %v2101_v22 = vunpack.i.l.bf16 %v2100_v20 }
 0x600   :  { %v2017_v23 = vpack.c.bf16 %v2102_v21, %v2101_v22 }
 0x602   :  { %2018 = vmatprep.subr.bf16.mxu1 %v2017_v23  ;;  %v2146_v24 = vpop.eup %2145 }
 0x603   :  { %2020 = vmatpush3.bf16.msra.mxu1 %v2017_v23  ;;  %v542_v27 = vmul.f32 %v2146_v24, %v530_v11 }
 0x604   :  { %2022 = vmatprep.subr.bf16.mxu1 %v2021_v29 }
 0x606   :  { %v2148_v25 = vpop.eup %2147 }
 0x607   :  { %v541_v26 = vmul.f32 %v2148_v25, %v529_v13 }
 0x609   :  { %1921 = vmatprep.mubr.msk.f32.mxu1 %vm304_vm5, %v541_v26 }
 0x60a   :  { %1922 = vmatmul.mubr.msk.f32.vlgmr.msra.gmra.mrb[2].mxu1 %vm304_vm5, %v542_v27 }
 0x60b   :  { %2024 = vmatpush3.bf16.msra.mxu1 %v2021_v29 }
 0x6dd   :  { %v1923_v30 = vpop.f32.mrb[2].mxu1 }
 0x6de   :  { %v621_v31 = vpop.f32.mrb[3].mxu1 }
 0x6df   :  { %632 = vrot.lane.b32.xlu0 %v621_v31, %s2370_s14 }
 0x6e3   :  { %634 = vrot.lane.b32.xlu0 %v1923_v30, %s2370_s14 }
 0x751   :  { %v633_v32 = vpop.permute.xlu0 %632 }
 0x752   :  { %v638_v33 = vsel %vm125_vm0, %v409_v53, %v633_v32 }
 0x753   :  { %1928 = vmatprep.mubr.msk.f32.mxu1 %vm304_vm5, %v638_v33 }
 0x755   :  { %v635_v34 = vpop.permute.xlu0 %634 }
 0x756   :  { %v639_v35 = vsel %vm125_vm0, %v2592_v52, %v635_v34 }
 0x757   :  { %1929 = vmatmul.mubr.msk.f32.vlgmr.msra.gmra.mrb[4].mxu1 %vm304_vm5, %v639_v35 }
 0x82a   :  { %v1930_v36 = vpop.f32.mrb[4].mxu1 }
 0x82b   :  { %727 = vrot.lane.b32.xlu0 %v1930_v36, %s2376_s6  ;;  %v714_v37 = vpop.f32.mrb[5].mxu1 }
 0x82c   :  { %725 = vrot.lane.b32.xlu1 %v714_v37, %s2376_s6  ;;  %v2025_v38 = vpack.c.bf16 %v1930_v36, %v714_v37  ;;  %v2619_v39 = vpack.i.bf16 %v1930_v36, %v714_v37 }
 0x82e   :  { %2027 = vmatprep.subr.msk.bf16.mxu0 %vm2546_vm1, %v2025_v38 }
 0x82f   :  { %2030 = vmatpush3.bf16.xpose.msk.msra.mxu0 %vm2546_vm1, %v2025_v38 }
 0x89d   :  { %v728_v41 = vpop.permute.xlu0 %727 }
 0x89e   :  { %v726_v40 = vpop.permute.xlu1 %725 }
 0x89f   :  { %1935 = vmatprep.mubr.msk.f32.mxu0 %vm125_vm0, %v726_v40 }
 0x8a0   :  { %1936 = vmatmul.mubr.msk.f32.vlgmr.msra.gmra.mrb[6].mxu0 %vm125_vm0, %v728_v41 }
 0x973   :  { %v1937_v42 = vpop.f32.mrb[6].mxu0 }
 0x974   :  { %vm813_vm9 = vcmp.gt.f32.partialorder %v1937_v42, 0.0  ;;  %v815_v43 = vmul.f32 0.2, %v1937_v42  ;;  %v803_v44 = vpop.f32.mrb[7].mxu0 }
 0x975   :  { %vm812_vm10 = vcmp.gt.f32.partialorder %v803_v44, 0.0  ;;  %v814_v45 = vmul.f32 0.2, %v803_v44 }
 0x976   :  { %v817_v46 = vsel %vm813_vm9, %v1937_v42, %v815_v43 }
 0x977   :  { %v819_v47 = vsel %vm121_vm6, %v817_v46, -1e+30  ;;  %v816_v48 = vsel %vm812_vm10, %v803_v44, %v814_v45 }
 0x978   :  { %v823_v49 = vsel %vm304_vm5, %v819_v47, -inf  ;;  %v818_v50 = vsel %vm120_vm4, %v816_v48, -1e+30 }
 0x979   :  { %824 = vmax.xlane.f32.xlu1 %v823_v49  ;;  %v820_v51 = vsel %vm304_vm5, %v818_v50, -inf }
 0x97a   :  { %821 = vmax.xlane.f32.xlu0 %v820_v51 }
 0x98a   :  { %2109 = vrot.lane.b32.xlu1 %v2619_v39, %s2378_s0 }
 0x98e   :  { %935 = vrot.lane.b32.xlu1 %v1930_v36, %s2379_s30 }
 0xa06   :  { %v825_v52 = vpop.xlane.xlu1 %824 }
 0xa07   :  { %v827_v53 = vsub.f32 %v817_v46, %v825_v52  ;;  %v822_v54 = vpop.xlane.xlu0 %821 }
 0xa08   :  { %v826_v55 = vsub.f32 %v816_v48, %v822_v54 }
 0xa09   :  { %v830_v56 = vmul.f32 1.442695, %v827_v53 }
 0xa0a   :  { %v828_v57 = vmul.f32 1.442695, %v826_v55  ;;  %v2110_v4 = vpop.permute.xlu1 %2109 }
 0xa0b   :  { %2149 = vpow2.f32 %v830_v56  ;;  %v2112_v8 = vunpack.i.h.bf16 %v2110_v4  ;;  %v2111_v9 = vunpack.i.l.bf16 %v2110_v4 }
 0xa0c   :  { %2151 = vpow2.f32 %v828_v57  ;;  %v1155_v57 = vld [vmem:[#allocation10] sm:$0xff] }
 0xa0d   :  { %v2035_v15 = vpack.c.bf16 %v2112_v8, %v2111_v9 }
 0xa0e   :  { %v936_v21 = vpop.permute.xlu1 %935 }
 0xa15   :  { %v2150_v58 = vpop.eup %2149 }
 0xa16   :  { %v2152_v59 = vpop.eup %2151  ;;  %v833_v60 = vsel %vm121_vm6, %v2150_v58, 0.0  ;;  %v1156_v58 = vld [vmem:[#allocation10 + $0x8] sm:$0xff] }
 0xa17   :  { %v837_v61 = vsel %vm304_vm5, %v833_v60, 0.0  ;;  %v832_v62 = vsel %vm120_vm4, %v2152_v59, 0.0  ;;  %v2045_v59 = vpack.c.bf16 %v1156_v58, %v1155_v57 }
 0xa18   :  { %838 = vadd.xlane.f32.xlu0 %v837_v61  ;;  %v834_v63 = vsel %vm304_vm5, %v832_v62, 0.0 }
 0xa1c   :  { %835 = vadd.xlane.f32.xlu0 %v834_v63 }
 0xa32   :  { %2104 = vrot.lane.b32.xlu0 %v2619_v39, %s2377_s3 }
 0xa36   :  { %933 = vrot.lane.b32.xlu0 %v714_v37, %s2379_s30 }
 0xaa5   :  { %v839_v0 = vpop.xlane.xlu0 %838 }
 0xaa6   :  { %v841_v1 = vmax.f32 %v839_v0, 1e-30 }
 0xaa8   :  { %2153 = vrcp.f32 %v841_v1 }
 0xaa9   :  { %v836_v2 = vpop.xlane.xlu0 %835 }
 0xaaa   :  { %v840_v3 = vmax.f32 %v836_v2, 1e-30 }
 0xaac   :  { %2155 = vrcp.f32 %v840_v3 }
 0xaad   :  { %v2105_v6 = vpop.permute.xlu0 %2104 }
 0xaae   :  { %v2107_v11 = vunpack.i.h.bf16 %v2105_v6  ;;  %v2106_v12 = vunpack.i.l.bf16 %v2105_v6 }
 0xab0   :  { %v2031_v13 = vpack.c.bf16 %v2107_v11, %v2106_v12 }
 0xab1   :  { %v934_v20 = vpop.permute.xlu0 %933 }
 0xab2   :  { %2032 = vmatprep.subr.bf16.mxu1 %v2031_v13  ;;  %v2154_v16 = vpop.eup %2153 }
 0xab3   :  { %2034 = vmatpush3.bf16.msra.mxu1 %v2031_v13  ;;  %v845_v19 = vmul.f32 %v2154_v16, %v833_v60 }
 0xab4   :  { %2037 = vmatprep.subr.msk.bf16.mxu1 %vm2546_vm1, %v2035_v15 }
 0xab6   :  { %v2156_v17 = vpop.eup %2155 }
 0xab7   :  { %v844_v18 = vmul.f32 %v2156_v17, %v832_v62 }
 0xab9   :  { %1942 = vmatprep.mubr.msk.f32.mxu1 %vm304_vm5, %v844_v18 }
 0xaba   :  { %1943 = vmatmul.mubr.msk.f32.vlgmr.msra.gmra.mrb[6].mxu1 %vm304_vm5, %v845_v19 }
 0xabb   :  { %1949 = vmatprep.mubr.msk.f32.mxu1 %vm125_vm0, %v934_v20 }
 0xabc   :  { %2040 = vmatpush3.bf16.xpose.msk.msra.mxu1 %vm2546_vm1, %v2035_v15 }
 0xac3   :  { %1950 = vmatmul.mubr.msk.f32.vlgmr.msra.gmra.mrb[8].mxu1 %vm125_vm0, %v936_v21 }
 0xb8d   :  { %v2653_v22 = vpop.f32.mrb[6].mxu1 }
 0xb8e   :  { %v924_v23 = vpop.f32.mrb[7].mxu1 }
 0xb96   :  { %v1951_v24 = vpop.f32.mrb[8].mxu1 }
 0xb97   :  { %vm1025_vm11 = vcmp.gt.f32.partialorder %v1951_v24, 0.0  ;;  %v1027_v25 = vmul.f32 0.2, %v1951_v24  ;;  %v1015_v26 = vpop.f32.mrb[9].mxu1 }
 0xb98   :  { %vm1024_vm12 = vcmp.gt.f32.partialorder %v1015_v26, 0.0  ;;  %v1026_v27 = vmul.f32 0.2, %v1015_v26 }
 0xb99   :  { %v1029_v7 = vsel %vm1025_vm11, %v1951_v24, %v1027_v25 }
 0xb9a   :  { %v1031_v28 = vsel %vm121_vm6, %v1029_v7, -1e+30  ;;  %v1028_v29 = vsel %vm1024_vm12, %v1015_v26, %v1026_v27 }
 0xb9b   :  { %v1035_v30 = vsel %vm304_vm5, %v1031_v28, -inf  ;;  %v1030_v31 = vsel %vm120_vm4, %v1028_v29, -1e+30 }
 0xb9c   :  { %1036 = vmax.xlane.f32.xlu1 %v1035_v30  ;;  %v1032_v32 = vsel %vm304_vm5, %v1030_v31, -inf }
 0xb9d   :  { %1033 = vmax.xlane.f32.xlu0 %v1032_v32 }
 0xbad   :  { %2114 = vrot.lane.b32.xlu1 %v2619_v39, %s2380_s27 }
 0xc29   :  { %v1037_v33 = vpop.xlane.xlu1 %1036 }
 0xc2a   :  { %v1039_v34 = vsub.f32 %v1029_v7, %v1037_v33  ;;  %v1034_v35 = vpop.xlane.xlu0 %1033 }
 0xc2b   :  { %v1038_v36 = vsub.f32 %v1028_v29, %v1034_v35 }
 0xc2c   :  { %v1042_v37 = vmul.f32 1.442695, %v1039_v34 }
 0xc2d   :  { %v1040_v38 = vmul.f32 1.442695, %v1038_v36  ;;  %v2115_v40 = vpop.permute.xlu1 %2114 }
 0xc2e   :  { %2157 = vpow2.f32 %v1042_v37  ;;  %v2117_v41 = vunpack.i.h.bf16 %v2115_v40  ;;  %v2116_v42 = vunpack.i.l.bf16 %v2115_v40 }
 0xc2f   :  { %2159 = vpow2.f32 %v1040_v38 }
 0xc30   :  { %v2041_v43 = vpack.c.bf16 %v2117_v41, %v2116_v42 }
 0xc32   :  { %2042 = vmatprep.subr.bf16.mxu0 %v2041_v43 }
 0xc33   :  { %2044 = vmatpush3.bf16.msra.mxu0 %v2041_v43 }
 0xc34   :  { %2046 = vmatprep.subr.bf16.mxu0 %v2045_v59 }
 0xc38   :  { %v2158_v44 = vpop.eup %2157 }
 0xc39   :  { %v2160_v45 = vpop.eup %2159  ;;  %v1045_v47 = vsel %vm121_vm6, %v2158_v44, 0.0 }
 0xc3a   :  { %v1044_v46 = vsel %vm120_vm4, %v2160_v45, 0.0  ;;  %v1049_v48 = vsel %vm304_vm5, %v1045_v47, 0.0 }
 0xc3b   :  { %v1046_v39 = vsel %vm304_vm5, %v1044_v46, 0.0 }
 0xc3c   :  { %1047 = vadd.xlane.f32.xlu0 %v1046_v39 }
 0xc40   :  { %1050 = vadd.xlane.f32.xlu0 %v1049_v48 }
 0xcc9   :  { %v1048_v49 = vpop.xlane.xlu0 %1047 }
 0xcca   :  { %v1052_v50 = vmax.f32 %v1048_v49, 1e-30 }
 0xccc   :  { %2161 = vrcp.f32 %v1052_v50 }
 0xccd   :  { %v1051_v51 = vpop.xlane.xlu0 %1050 }
 0xcce   :  { %v1053_v52 = vmax.f32 %v1051_v51, 1e-30 }
 0xcd0   :  { %2163 = vrcp.f32 %v1053_v52 }
 0xcd6   :  { %v2162_v53 = vpop.eup %2161 }
 0xcd7   :  { %v1056_v54 = vmul.f32 %v2162_v53, %v1044_v46 }
 0xcd9   :  { %1956 = vmatprep.mubr.msk.f32.mxu0 %vm304_vm5, %v1056_v54 }
 0xcda   :  { %v2164_v55 = vpop.eup %2163 }
 0xcdb   :  { %v1057_v56 = vmul.f32 %v2164_v55, %v1045_v47 }
 0xcdd   :  { %1957 = vmatmul.mubr.msk.f32.vlgmr.msra.gmra.mrb[8].mxu0 %vm304_vm5, %v1057_v56 }
 0xcde   :  { %2048 = vmatpush3.bf16.msra.mxu0 %v2045_v59 }
 0xdb0   :  { %v1958_v60 = vpop.f32.mrb[8].mxu0 }
 0xdb1   :  { %1149 = vrot.lane.b32.xlu1 %v1958_v60, %s2370_s14  ;;  %v1136_v61 = vpop.f32.mrb[9].mxu0 }
 0xdb2   :  { %1147 = vrot.lane.b32.xlu0 %v1136_v61, %s2370_s14 }
 0xe23   :  { %v1150_v62 = vpop.permute.xlu1 %1149 }
 0xe24   :  { %v1148_v63 = vpop.permute.xlu0 %1147  ;;  %v1154_v1 = vsel %vm125_vm0, %v2653_v22, %v1150_v62 }
 0xe25   :  { %v1153_v0 = vsel %vm125_vm0, %v924_v23, %v1148_v63 }
 0xe26   :  { %1963 = vmatprep.mubr.msk.f32.mxu0 %vm304_vm5, %v1153_v0 }
 0xe27   :  { %1964 = vmatmul.mubr.msk.f32.vlgmr.msra.gmra.mrb[10].mxu0 %vm304_vm5, %v1154_v1 }
 0xefa   :  { %v1965_v2 = vpop.f32.mrb[10].mxu0 }
 0xefb   :  { %1242 = vrot.lane.b32.xlu0 %v1965_v2, %s2376_s6  ;;  %v1229_v3 = vpop.f32.mrb[11].mxu0 }
 0xefc   :  { %1240 = vrot.lane.b32.xlu1 %v1229_v3, %s2376_s6  ;;  %v2049_v4 = vpack.c.bf16 %v1965_v2, %v1229_v3  ;;  %v2680_v6 = vpack.i.bf16 %v1965_v2, %v1229_v3 }
 0xefe   :  { %2051 = vmatprep.subr.msk.bf16.mxu1 %vm2546_vm1, %v2049_v4 }
 0xeff   :  { %2054 = vmatpush3.bf16.xpose.msk.msra.mxu1 %vm2546_vm1, %v2049_v4 }
 0xf6d   :  { %v1243_v9 = vpop.permute.xlu0 %1242 }
 0xf6e   :  { %v1241_v8 = vpop.permute.xlu1 %1240 }
 0xf6f   :  { %1970 = vmatprep.mubr.msk.f32.mxu1 %vm125_vm0, %v1241_v8 }
 0xf70   :  { %1971 = vmatmul.mubr.msk.f32.vlgmr.msra.gmra.mrb[10].mxu1 %vm125_vm0, %v1243_v9 }
0x1043   :  { %v1972_v11 = vpop.f32.mrb[10].mxu1 }
0x1044   :  { %vm1328_vm13 = vcmp.gt.f32.partialorder %v1972_v11, 0.0  ;;  %v1330_v12 = vmul.f32 0.2, %v1972_v11  ;;  %v1318_v13 = vpop.f32.mrb[11].mxu1 }
0x1045   :  { %vm1327_vm14 = vcmp.gt.f32.partialorder %v1318_v13, 0.0  ;;  %v1329_v15 = vmul.f32 0.2, %v1318_v13 }
0x1046   :  { %v1332_v16 = vsel %vm1328_vm13, %v1972_v11, %v1330_v12 }
0x1047   :  { %v1334_v17 = vsel %vm121_vm6, %v1332_v16, -1e+30  ;;  %v1331_v18 = vsel %vm1327_vm14, %v1318_v13, %v1329_v15 }
0x1048   :  { %v1338_v19 = vsel %vm304_vm5, %v1334_v17, -inf  ;;  %v1333_v20 = vsel %vm120_vm4, %v1331_v18, -1e+30 }
0x1049   :  { %1339 = vmax.xlane.f32.xlu0 %v1338_v19  ;;  %v1335_v21 = vsel %vm304_vm5, %v1333_v20, -inf }
0x104a   :  { %1336 = vmax.xlane.f32.xlu1 %v1335_v21 }
0x10d6   :  { %v1340_v22 = vpop.xlane.xlu0 %1339 }
0x10d7   :  { %v1342_v23 = vsub.f32 %v1332_v16, %v1340_v22  ;;  %v1337_v24 = vpop.xlane.xlu1 %1336 }
0x10d8   :  { %v1341_v25 = vsub.f32 %v1331_v18, %v1337_v24 }
0x10d9   :  { %v1345_v26 = vmul.f32 1.442695, %v1342_v23 }
0x10da   :  { %v1343_v27 = vmul.f32 1.442695, %v1341_v25  ;;  %v1671_v25 = vld [vmem:[#allocation11 + $0x8] sm:$0xff] }
0x10db   :  { %2165 = vpow2.f32 %v1345_v26 }
0x10dc   :  { %2167 = vpow2.f32 %v1343_v27 }
0x10e5   :  { %v2166_v7 = vpop.eup %2165 }
0x10e6   :  { %v2168_v28 = vpop.eup %2167  ;;  %v1348_v29 = vsel %vm121_vm6, %v2166_v7, 0.0 }
0x10e7   :  { %v1352_v30 = vsel %vm304_vm5, %v1348_v29, 0.0  ;;  %v1347_v31 = vsel %vm120_vm4, %v2168_v28, 0.0 }
0x10e8   :  { %1353 = vadd.xlane.f32.xlu1 %v1352_v30  ;;  %v1349_v32 = vsel %vm304_vm5, %v1347_v31, 0.0 }
0x10e9   :  { %1350 = vadd.xlane.f32.xlu0 %v1349_v32  ;;  %v1825_v32 = vld [vmem:[#allocation13] ss:$0 sm:$0xff] }
0x10f9   :  { %2124 = vrot.lane.b32.xlu1 %v2680_v6, %s2378_s0 }
0x10fd   :  { %1448 = vrot.lane.b32.xlu1 %v1229_v3, %s2379_s30 }
0x10ff   :  { %2119 = vrot.lane.b32.xlu0 %v2680_v6, %s2377_s3 }
0x1103   :  { %1450 = vrot.lane.b32.xlu0 %v1965_v2, %s2379_s30 }
0x1175   :  { %v1354_v33 = vpop.xlane.xlu1 %1353 }
0x1176   :  { %v1356_v34 = vmax.f32 %v1354_v33, 1e-30  ;;  %v1351_v35 = vpop.xlane.xlu0 %1350 }
0x1177   :  { %v1355_v36 = vmax.f32 %v1351_v35, 1e-30 }
0x1178   :  { %2169 = vrcp.f32 %v1356_v34 }
0x1179   :  { %2171 = vrcp.f32 %v1355_v36  ;;  %v2125_v37 = vpop.permute.xlu1 %2124 }
0x117a   :  { %v2120_v38 = vpop.permute.xlu0 %2119  ;;  %v2127_v40 = vunpack.i.h.bf16 %v2125_v37  ;;  %v2126_v41 = vunpack.i.l.bf16 %v2125_v37 }
0x117b   :  { %v2122_v42 = vunpack.i.h.bf16 %v2120_v38  ;;  %v2121_v43 = vunpack.i.l.bf16 %v2120_v38 }
0x117c   :  { %v2059_v45 = vpack.c.bf16 %v2127_v40, %v2126_v41 }
0x117d   :  { %v2055_v44 = vpack.c.bf16 %v2122_v42, %v2121_v43  ;;  %v1449_v49 = vpop.permute.xlu1 %1448 }
0x117e   :  { %v1451_v50 = vpop.permute.xlu0 %1450 }
0x117f   :  { %2056 = vmatprep.subr.bf16.mxu0 %v2055_v44 }
0x1180   :  { %2058 = vmatpush3.bf16.msra.mxu0 %v2055_v44 }
0x1181   :  { %2061 = vmatprep.subr.msk.bf16.mxu0 %vm2546_vm1, %v2059_v45 }
0x1182   :  { %v2170_v46 = vpop.eup %2169 }
0x1183   :  { %v2172_v39 = vpop.eup %2171  ;;  %v1360_v48 = vmul.f32 %v2170_v46, %v1348_v29 }
0x1184   :  { %v1359_v47 = vmul.f32 %v2172_v39, %v1347_v31 }
0x1186   :  { %1977 = vmatprep.mubr.msk.f32.mxu0 %vm304_vm5, %v1359_v47 }
0x1187   :  { %1978 = vmatmul.mubr.msk.f32.vlgmr.msra.gmra.mrb[12].mxu0 %vm304_vm5, %v1360_v48 }
0x1188   :  { %1984 = vmatprep.mubr.msk.f32.mxu0 %vm125_vm0, %v1449_v49 }
0x1189   :  { %2064 = vmatpush3.bf16.xpose.msk.msra.mxu0 %vm2546_vm1, %v2059_v45  ;;  %vm1760_vm1 = vcmask 15360  }
0x1190   :  { %1985 = vmatmul.mubr.msk.f32.vlgmr.msra.gmra.mrb[14].mxu0 %vm125_vm0, %v1451_v50 }
0x125a   :  { %v2714_v51 = vpop.f32.mrb[12].mxu0 }
0x125b   :  { %v1439_v52 = vpop.f32.mrb[13].mxu0 }
0x1263   :  { %v1986_v53 = vpop.f32.mrb[14].mxu0 }
0x1264   :  { %vm1540_vm15 = vcmp.gt.f32.partialorder %v1986_v53, 0.0  ;;  %v1542_v54 = vmul.f32 0.2, %v1986_v53  ;;  %v1530_v55 = vpop.f32.mrb[15].mxu0 }
0x1265   :  { %vm1539_vm2 = vcmp.gt.f32.partialorder %v1530_v55, 0.0  ;;  %v1541_v56 = vmul.f32 0.2, %v1530_v55 }
0x1266   :  { %v1544_v57 = vsel %vm1540_vm15, %v1986_v53, %v1542_v54 }
0x1267   :  { %v1543_v58 = vsel %vm1539_vm2, %v1530_v55, %v1541_v56  ;;  %v1546_v59 = vsel %vm121_vm6, %v1544_v57, -1e+30 }
0x1268   :  { %v1550_v5 = vsel %vm304_vm5, %v1546_v59, -inf  ;;  %v1545_v60 = vsel %vm120_vm4, %v1543_v58, -1e+30 }
0x1269   :  { %1551 = vmax.xlane.f32.xlu0 %v1550_v5  ;;  %v1547_v61 = vsel %vm304_vm5, %v1545_v60, -inf }
0x126a   :  { %1548 = vmax.xlane.f32.xlu1 %v1547_v61 }
0x12f6   :  { %v1552_v62 = vpop.xlane.xlu0 %1551 }
0x12f7   :  { %v1554_v63 = vsub.f32 %v1544_v57, %v1552_v62  ;;  %v1549_v0 = vpop.xlane.xlu1 %1548 }
0x12f8   :  { %v1553_v1 = vsub.f32 %v1543_v58, %v1549_v0 }
0x12f9   :  { %v1557_v2 = vmul.f32 1.442695, %v1554_v63 }
0x12fa   :  { %v1555_v3 = vmul.f32 1.442695, %v1553_v1 }
0x12fb   :  { %2173 = vpow2.f32 %v1557_v2 }
0x12fc   :  { %2175 = vpow2.f32 %v1555_v3 }
0x1305   :  { %v2174_v4 = vpop.eup %2173 }
0x1306   :  { %v2176_v8 = vpop.eup %2175  ;;  %v1560_v9 = vsel %vm121_vm6, %v2174_v4, 0.0 }
0x1307   :  { %v1564_v11 = vsel %vm304_vm5, %v1560_v9, 0.0  ;;  %v1559_v12 = vsel %vm120_vm4, %v2176_v8, 0.0 }
0x1308   :  { %1565 = vadd.xlane.f32.xlu1 %v1564_v11  ;;  %v1561_v13 = vsel %vm304_vm5, %v1559_v12, 0.0 }
0x1309   :  { %1562 = vadd.xlane.f32.xlu0 %v1561_v13 }
0x131f   :  { %2129 = vrot.lane.b32.xlu0 %v2680_v6, %s2380_s27  ;;  %v1670_v6 = vld [vmem:[#allocation11] sm:$0xff] }
0x1320   :  { %v2069_v26 = vpack.c.bf16 %v1671_v25, %v1670_v6 }
0x1395   :  { %v1566_v15 = vpop.xlane.xlu1 %1565 }
0x1396   :  { %v1568_v16 = vmax.f32 %v1566_v15, 1e-30  ;;  %v1563_v17 = vpop.xlane.xlu0 %1562 }
0x1397   :  { %v1567_v18 = vmax.f32 %v1563_v17, 1e-30 }
0x1398   :  { %2177 = vrcp.f32 %v1568_v16 }
0x1399   :  { %2179 = vrcp.f32 %v1567_v18 }
0x139a   :  { %v2130_v14 = vpop.permute.xlu0 %2129 }
0x139b   :  { %v2132_v19 = vunpack.i.h.bf16 %v2130_v14  ;;  %v2131_v20 = vunpack.i.l.bf16 %v2130_v14 }
0x139d   :  { %v2065_v21 = vpack.c.bf16 %v2132_v19, %v2131_v20 }
0x139f   :  { %2066 = vmatprep.subr.bf16.mxu1 %v2065_v21 }
0x13a0   :  { %2068 = vmatpush3.bf16.msra.mxu1 %v2065_v21 }
0x13a1   :  { %2070 = vmatprep.subr.bf16.mxu1 %v2069_v26 }
0x13a2   :  { %v2178_v10 = vpop.eup %2177 }
0x13a3   :  { %v2180_v22 = vpop.eup %2179  ;;  %v1572_v24 = vmul.f32 %v2178_v10, %v1560_v9 }
0x13a4   :  { %v1571_v23 = vmul.f32 %v2180_v22, %v1559_v12 }
0x13a6   :  { %1991 = vmatprep.mubr.msk.f32.mxu1 %vm304_vm5, %v1571_v23 }
0x13a7   :  { %1992 = vmatmul.mubr.msk.f32.vlgmr.msra.gmra.mrb[12].mxu1 %vm304_vm5, %v1572_v24 }
0x13a8   :  { %2072 = vmatpush3.bf16.msra.mxu1 %v2069_v26 }
0x147a   :  { %v1993_v27 = vpop.f32.mrb[12].mxu1 }
0x147b   :  { %v1651_v7 = vpop.f32.mrb[13].mxu1 }
0x147c   :  { %1662 = vrot.lane.b32.xlu1 %v1651_v7, %s2370_s14 }
0x1480   :  { %1664 = vrot.lane.b32.xlu1 %v1993_v27, %s2370_s14 }
0x14ee   :  { %v1663_v28 = vpop.permute.xlu1 %1662 }
0x14ef   :  { %v1668_v29 = vsel %vm125_vm0, %v1439_v52, %v1663_v28 }
0x14f0   :  { %1998 = vmatprep.mubr.msk.f32.mxu1 %vm304_vm5, %v1668_v29 }
0x14f2   :  { %v1665_v30 = vpop.permute.xlu1 %1664 }
0x14f3   :  { %v1669_v31 = vsel %vm125_vm0, %v2714_v51, %v1665_v30 }
0x14f4   :  { %1999 = vmatmul.mubr.msk.f32.vlgmr.msra.gmra.mrb[14].mxu1 %vm304_vm5, %v1669_v31 }
0x15c7   :  { %v2000_v33 = vpop.f32.mrb[14].mxu1 }
0x15c8   :  { %v1757_v34 = vadd.f32 %v2000_v33, %v1825_v32  ;;  %v1751_v35 = vpop.f32.mrb[15].mxu1 }
0x15c9   :  { %v1752_v36 = vadd.f32 %v1825_v32, %v1751_v35 }
0x15ca   :  { %1762 = vst.msk [vmem:[#allocation14 + $0x8] sm:$0xff] %vm1760_vm1, %v1757_v34 }
0x15cb   :  { %1761 = vst.msk [vmem:[#allocation14] sm:$0xff] %vm1760_vm1, %v1752_v36 }
0x15cc   :  { %2346 = shalt.err (!%p2343_p4)
}
0x15cd   :  { %s2347_s22 = scalar_lea.hbm %s2761_s7, 256 }
0x15ce   :  { %p2348_p5 = scmp.ne.s32.totalorder %s2761_s7, %s2347_s22  ;;  %p2351_p6 = scmp.lt.u32.totalorder %s2347_s22, %s2761_s7 }
0x15d0   :  { %p2353_p7 = pnand %p2351_p6, %p2348_p5 }
0x15d2   :  { %2356 = shalt.err (!%p2353_p7)
}
0x15d3   :  { %1774 = dma.vmem_to_hbm [thread:$0]  %s1769_s18, 256, %s2761_s7, [#allocation4], %s2369_s13, %s2369_s13, %s2370_s14  }
0x15d4   :  { %2365 = dma.done.wait [#allocation4], 256  }
0x15d5   :  { %2366 = vsyncadd [#allocation4], 4294967040 }
0x15d6   :  { %1778 = vsyncpa [#allocation3], 1 }
0x15d7   :  { %1779 = vsyncpa [#allocation6], 1 }
0x15d8   :  { %1780 = vsyncpa [#allocation9], 1 }
0x15d9   :  { %1781 = vsyncpa [#allocation12], 1 }
0x15da   :  { %1782 = vsyncpa [#allocation4], 1 }

</bundles_post_ra>
